<compile_context>
chip_gen: v6e
topology: v6e:2x2x1
jax: 0.10.0
libtpu: 0.0.40
codegen_flags: <defaults>
</compile_context>

<pallas_src>
import functools

import jax
import jax.numpy as jnp
from jax.experimental import pallas as pl
from jax.experimental.pallas import tpu as pltpu


def workout_fwd_kernel(x_ref, w_ref, b_ref, t_ref, lsum_ref, pred_ref, *scratch,
                       tm, tn, m_valid, n_valid, mask_rows, mask_cols):
    """One (i, j, k) grid step of pred = x @ W + b and the MSE partial sum."""
    # Hoist ALL grid queries to the kernel top level (never inside pl.when
    # bodies -- nested cond branches cannot lower program_id on the
    # interpreter, and on TPU this costs nothing).
    i = pl.program_id(0)
    j = pl.program_id(1)
    k = pl.program_id(2)
    nk = pl.num_programs(2)

    # f32 output: accumulate straight into the resident pred output block.
    # Low-precision output: accumulate into the f32 VMEM scratch.
    acc_ref = scratch[0] if scratch else pred_ref

    @pl.when(k == 0)
    def _init():
        acc_ref[...] = jnp.zeros_like(acc_ref)

    # MXU matmul in the native input dtype, f32 accumulation.
    acc_ref[...] += jnp.dot(x_ref[...], w_ref[...],
                            preferred_element_type=jnp.float32)

    @pl.when(k == nk - 1)
    def _finalize():
        pred_f32 = acc_ref[...].astype(jnp.float32) + b_ref[...].astype(jnp.float32)
        pred_out = pred_f32.astype(pred_ref.dtype)
        pred_ref[...] = pred_out

        # Loss from the dtype-cast pred (matches F.mse_loss(model(x), target)).
        diff = pred_out.astype(jnp.float32) - t_ref[...].astype(jnp.float32)

        # Narrow masks, only along dims that actually carry padding (static).
        if mask_rows or mask_cols:
            mask = None
            if mask_rows:
                rows = i * tm + jax.lax.broadcasted_iota(jnp.int32, (tm, 1), 0)
                mask = rows < m_valid
            if mask_cols:
                cols = j * tn + jax.lax.broadcasted_iota(jnp.int32, (1, tn), 1)
                cmask = cols < n_valid
                mask = cmask if mask is None else (mask & cmask)
            diff = jnp.where(mask, diff, 0.0)

        psum = jnp.sum(diff * diff)
        # Lane-dense (8,128) slab per (i,j) tile: unmasked vst, no 1-lane write.
        lsum_ref[...] = jnp.full((8, 128), psum, dtype=jnp.float32)


def _round_up(x, g):
    return pl.cdiv(x, g) * g


def _select_tiles(M, K, N, dtype, tm_req, tn_req, tk_req):
    """Pick tiles under a generation-safe VMEM budget, dtype-aware granularity."""
    itemsize = jnp.dtype(dtype).itemsize
    m_gran = {4: 8, 2: 16, 1: 32}.get(itemsize, 8)
    use_scratch = jnp.dtype(dtype) != jnp.dtype(jnp.float32)

    # Defaults per perf review: large tiles, and take the whole K when it fits
    # (gk == 1 removes the k-loop / accumulator branches entirely).
    tm_want = 512 if tm_req is None else tm_req
    tn_want = (512 if itemsize >= 4 else 1024) if tn_req is None else tn_req
    tk_want = 2048 if tk_req is None else tk_req

    tm = min(_round_up(tm_want, m_gran), _round_up(M, m_gran))
    tn = min(_round_up(tn_want, 128), _round_up(N, 128))
    tk = min(_round_up(tk_want, 128), _round_up(K, 128))

    def vmem_bytes(tm_, tn_, tk_):
        acc = tm_ * tn_ * 4 if use_scratch else 0
        return (2 * (tm_ * tk_ + tk_ * tn_) * itemsize   # x, w (double-buffered)
                + 2 * tm_ * tn_ * itemsize               # target
                + 2 * tm_ * tn_ * itemsize               # pred output
                + 2 * tn_ * itemsize                     # bias
                + 2 * 8 * 128 * 4                        # loss psum slab
                + acc)

    # ~28 MiB fits every generation's VMEM (v7x: 64 MiB physical per TC).
    budget = 28 * 2**20
    while vmem_bytes(tm, tn, tk) > budget and tk > 512:
        tk = max(512, _round_up(tk // 2, 128))
    while vmem_bytes(tm, tn, tk) > budget and tn > 256:
        tn = max(256, _round_up(tn // 2, 128))
    while vmem_bytes(tm, tn, tk) > budget and tm > 8 * m_gran:
        tm = max(8 * m_gran, _round_up(tm // 2, m_gran))

    # v7x megacore balance: ensure >= 2 (i, j) tiles so both TensorCores get
    # work under dimension_semantics=("parallel", "parallel", "arbitrary").
    if pl.cdiv(M, tm) * pl.cdiv(N, tn) < 2:
        n_blocks = pl.cdiv(N, 128)
        m_blocks = pl.cdiv(M, m_gran)
        if tn >= 256 and n_blocks >= 2:
            tn = pl.cdiv(n_blocks, 2) * 128
        elif tm >= 2 * m_gran and m_blocks >= 2:
            tm = pl.cdiv(m_blocks, 2) * m_gran

    Mp = _round_up(M, tm)
    Np = _round_up(N, tn)
    Kp = _round_up(K, tk)
    return tm, tn, tk, Mp, Np, Kp, vmem_bytes(tm, tn, tk), use_scratch


def workout_forward(x, w, b, target, *, tm=None, tn=None, tk=None):
    """Returns (loss, pred) exactly like Workout.forward with a Linear model
    and mean-reduction MSE loss.

    x: (B, Din), w: (Din, Dout) (transpose of PyTorch's weight),
    b: (Dout,) or (1, Dout), target: (B, Dout).
    """
    M, K = x.shape
    K2, N = w.shape
    assert K == K2 and target.shape == (M, N)
    b2 = b.reshape(1, N)
    itemsize = jnp.dtype(x.dtype).itemsize

    tm, tn, tk, Mp, Np, Kp, vmem_need, use_scratch = _select_tiles(
        M, K, N, x.dtype, tm, tn, tk)

    xp = jnp.pad(x, ((0, Mp - M), (0, Kp - K))) if (Mp, Kp) != (M, K) else x
    wp = jnp.pad(w, ((0, Kp - K), (0, Np - N))) if (Kp, Np) != (K, N) else w
    bp = jnp.pad(b2, ((0, 0), (0, Np - N))) if Np != N else b2
    tp = (jnp.pad(target, ((0, Mp - M), (0, Np - N)))
          if (Mp, Np) != (M, N) else target)

    gm, gn, gk = Mp // tm, Np // tn, Kp // tk

    kernel = functools.partial(
        workout_fwd_kernel, tm=tm, tn=tn, m_valid=M, n_valid=N,
        mask_rows=(Mp != M), mask_cols=(Np != N))

    scratch_shapes = [pltpu.VMEM((tm, tn), jnp.float32)] if use_scratch else []

    # Include HBM reuse factors: x is re-read gn times, w gm times.
    cost = pl.CostEstimate(
        flops=2 * Mp * Kp * Np + 3 * Mp * Np,
        transcendentals=0,
        bytes_accessed=(itemsize * (Mp * Kp * gn + Kp * Np * gm
                                    + 2 * Mp * Np + Np * gm * gn)
                        + 4 * gm * gn * 8 * 128),
    )

    vmem_limit = int(min(100 * 2**20, max(32 * 2**20, vmem_need * 5 // 4)))

    lsum, pred_p = pl.pallas_call(
        kernel,
        out_shape=(
            jax.ShapeDtypeStruct((gm * 8, gn * 128), jnp.float32),  # loss psums
            jax.ShapeDtypeStruct((Mp, Np), x.dtype),                # pred (padded)
        ),
        grid_spec=pltpu.PrefetchScalarGridSpec(
            num_scalar_prefetch=0,
            grid=(gm, gn, gk),
            in_specs=[
                pl.BlockSpec((tm, tk), lambda i, j, k: (i, k)),   # x
                pl.BlockSpec((tk, tn), lambda i, j, k: (k, j)),   # W
                pl.BlockSpec((1, tn), lambda i, j, k: (0, j)),    # bias
                pl.BlockSpec((tm, tn), lambda i, j, k: (i, j)),   # target
            ],
            out_specs=[
                pl.BlockSpec((8, 128), lambda i, j, k: (i, j)),   # loss psum slab
                pl.BlockSpec((tm, tn), lambda i, j, k: (i, j)),   # pred
            ],
            scratch_shapes=scratch_shapes,
        ),
        compiler_params=pltpu.CompilerParams(
            dimension_semantics=("parallel", "parallel", "arbitrary"),
            vmem_limit_bytes=vmem_limit),
        cost_estimate=cost,
    )(xp, wp, bp, tp)

    pred = pred_p[:M, :N]
    # Single divide-by-(M*N) in the wrapper (F.mse_loss mean reduction).
    loss = jnp.sum(lsum[0::8, 0::128]) / (M * N)
    return loss, pred


if __name__ == "__main__":
    key = jax.random.PRNGKey(0)
    k_x, k_t, k_w, k_b = jax.random.split(key, 4)

    # ---------------- float32 path (Linear + mean MSE) ----------------------
    # Non-trivial shapes: exercises N-splitting for megacore balance plus
    # column padding/masking (200 -> 256).
    B, Din, Dout = 160, 300, 200
    x = jax.random.normal(k_x, (B, Din), dtype=jnp.float32)
    target = jax.random.normal(k_t, (B, Dout), dtype=jnp.float32)
    bound = 1.0 / (Din ** 0.5)
    w = jax.random.uniform(k_w, (Din, Dout), dtype=jnp.float32,
                           minval=-bound, maxval=bound)
    b = jax.random.uniform(k_b, (Dout,), dtype=jnp.float32,
                           minval=-bound, maxval=bound)

    pred_ref = x @ w + b[None, :]
    loss_ref = jnp.mean((pred_ref - target) ** 2)

    # 1) Auto tiles: gk == 1, accumulation directly into the pred output.
    loss, pred = workout_forward(x, w, b, target)
    jax.block_until_ready((loss, pred))
    assert pred.shape == (B, Dout)
    assert jnp.allclose(pred, pred_ref, atol=1e-4, rtol=1e-4), "pred mismatch"
    assert jnp.allclose(loss, loss_ref, atol=1e-4, rtol=1e-4), "loss mismatch"

    # 2) Forced small tiles: exercises the multi-step K loop, the k==0/k==last
    #    branches and both row/col masks (160 -> 256, 200 -> 256, 300 -> 384).
    loss2, pred2 = workout_forward(x, w, b, target, tm=128, tn=128, tk=128)
    jax.block_until_ready((loss2, pred2))
    assert jnp.allclose(pred2, pred_ref, atol=1e-4, rtol=1e-4), "pred mismatch (small tiles)"
    assert jnp.allclose(loss2, loss_ref, atol=1e-4, rtol=1e-4), "loss mismatch (small tiles)"

    # ---------------- bfloat16 path (f32 scratch accumulator) ---------------
    Bb, Dinb, Doutb = 32, 64, 48
    xb = jax.random.normal(k_x, (Bb, Dinb), dtype=jnp.float32).astype(jnp.bfloat16)
    tb = jax.random.normal(k_t, (Bb, Doutb), dtype=jnp.float32).astype(jnp.bfloat16)
    wb = jax.random.uniform(k_w, (Dinb, Doutb), dtype=jnp.float32,
                            minval=-0.125, maxval=0.125).astype(jnp.bfloat16)
    bb = jax.random.uniform(k_b, (Doutb,), dtype=jnp.float32,
                            minval=-0.125, maxval=0.125).astype(jnp.bfloat16)

    loss_b, pred_b = workout_forward(xb, wb, bb, tb)
    jax.block_until_ready((loss_b, pred_b))
    pred_b_ref = (xb.astype(jnp.float32) @ wb.astype(jnp.float32)
                  + bb.astype(jnp.float32)[None, :]).astype(jnp.bfloat16)
    loss_b_ref = jnp.mean((pred_b_ref.astype(jnp.float32)
                           - tb.astype(jnp.float32)) ** 2)
    assert pred_b.shape == (Bb, Doutb) and pred_b.dtype == jnp.bfloat16
    assert jnp.allclose(pred_b.astype(jnp.float32), pred_b_ref.astype(jnp.float32),
                        atol=2e-2, rtol=2e-2), "bf16 pred mismatch"
    assert jnp.allclose(loss_b, loss_b_ref, atol=2e-2, rtol=2e-2), "bf16 loss mismatch"

    print("KERNEL_OK")
</pallas_src>

<mosaic_0001>
module attributes {stable_mosaic.version = 11 : i64} {
  func.func @workout_fwd_kernel(%arg0: i32, %arg1: i32, %arg2: i32, %arg3: memref<160x384xf32, #tpu.memory_space<vmem>>, %arg4: memref<384x128xf32, #tpu.memory_space<vmem>>, %arg5: memref<1x128xf32, #tpu.memory_space<vmem>>, %arg6: memref<160x128xf32, #tpu.memory_space<vmem>>, %arg7: memref<8x128xf32, #tpu.memory_space<vmem>>, %arg8: memref<160x128xf32, #tpu.memory_space<vmem>>) attributes {dimension_semantics = [#tpu.dimension_semantics<parallel>, #tpu.dimension_semantics<parallel>, #tpu.dimension_semantics<arbitrary>], iteration_bounds = array<i64: 1, 2, 1>, scalar_prefetch = 0 : i64, scratch_operands = 0 : i64, tpu.core_type = #tpu.core_type<tc>, window_params = [{transform_indices = @transform_0, window_bounds = array<i64: 160, 384>}, {transform_indices = @transform_1, window_bounds = array<i64: 384, 128>}, {transform_indices = @transform_2, window_bounds = array<i64: 1, 128>}, {transform_indices = @transform_3, window_bounds = array<i64: 160, 128>}, {transform_indices = @transform_4, window_bounds = array<i64: 8, 128>}, {transform_indices = @transform_5, window_bounds = array<i64: 160, 128>}]} {
    %c0_i32 = arith.constant 0 : i32
    %0 = arith.cmpi eq, %arg2, %c0_i32 : i32
    %1 = arith.extui %0 : i1 to i32
    %c0_i32_0 = arith.constant 0 : i32
    %2 = arith.cmpi ne, %1, %c0_i32_0 : i32
    scf.if %2 {
      %cst_10 = arith.constant 0.000000e+00 : f32
      %12 = vector.broadcast %cst_10 : f32 to vector<160x128xf32>
      %c0_11 = arith.constant 0 : index
      %c0_12 = arith.constant 0 : index
      %13 = vector.load %arg8[%c0_11, %c0_12] : memref<160x128xf32, #tpu.memory_space<vmem>>, vector<160x128xf32>
      tpu.vector_store %arg8[%c0_11, %c0_12], %12 {strides = array<i32>} : memref<160x128xf32, #tpu.memory_space<vmem>>, vector<160x128xf32>,
    } else {
    }
    %c0 = arith.constant 0 : index
    %c0_1 = arith.constant 0 : index
    %3 = vector.load %arg8[%c0, %c0_1] : memref<160x128xf32, #tpu.memory_space<vmem>>, vector<160x128xf32>
    %c0_2 = arith.constant 0 : index
    %c0_3 = arith.constant 0 : index
    %4 = vector.load %arg3[%c0_2, %c0_3] : memref<160x384xf32, #tpu.memory_space<vmem>>, vector<160x384xf32>
    %c0_4 = arith.constant 0 : index
    %c0_5 = arith.constant 0 : index
    %5 = vector.load %arg4[%c0_4, %c0_5] : memref<384x128xf32, #tpu.memory_space<vmem>>, vector<384x128xf32>
    %cst = arith.constant dense<0.000000e+00> : vector<160x128xf32>
    %6 = tpu.matmul %4, %5, %cst {dimension_numbers = #tpu.dot_dimension_numbers<[1], [0], [0], [1], [0, 0, 1, 1], [], []>} : vector<160x384xf32>, vector<384x128xf32>, vector<160x128xf32> -> vector<160x128xf32>
    %7 = arith.addf %3, %6 : vector<160x128xf32>
    %c0_6 = arith.constant 0 : index
    %c0_7 = arith.constant 0 : index
    %8 = vector.load %arg8[%c0_6, %c0_7] : memref<160x128xf32, #tpu.memory_space<vmem>>, vector<160x128xf32>
    tpu.vector_store %arg8[%c0_6, %c0_7], %7 {strides = array<i32>} : memref<160x128xf32, #tpu.memory_space<vmem>>, vector<160x128xf32>,
    %c0_i32_8 = arith.constant 0 : i32
    %9 = arith.cmpi eq, %arg2, %c0_i32_8 : i32
    %10 = arith.extui %9 : i1 to i32
    %c0_i32_9 = arith.constant 0 : i32
    %11 = arith.cmpi ne, %10, %c0_i32_9 : i32
    scf.if %11 {
      %c0_10 = arith.constant 0 : index
      %c0_11 = arith.constant 0 : index
      %12 = vector.load %arg8[%c0_10, %c0_11] : memref<160x128xf32, #tpu.memory_space<vmem>>, vector<160x128xf32>
      %c0_12 = arith.constant 0 : index
      %c0_13 = arith.constant 0 : index
      %13 = vector.load %arg5[%c0_12, %c0_13] : memref<1x128xf32, #tpu.memory_space<vmem>>, vector<1x128xf32>
      %14 = vector.broadcast %13 : vector<1x128xf32> to vector<160x128xf32>
      %15 = arith.addf %12, %14 : vector<160x128xf32>
      %c0_14 = arith.constant 0 : index
      %c0_15 = arith.constant 0 : index
      %16 = vector.load %arg8[%c0_14, %c0_15] : memref<160x128xf32, #tpu.memory_space<vmem>>, vector<160x128xf32>
      tpu.vector_store %arg8[%c0_14, %c0_15], %15 {strides = array<i32>} : memref<160x128xf32, #tpu.memory_space<vmem>>, vector<160x128xf32>,
      %c0_16 = arith.constant 0 : index
      %c0_17 = arith.constant 0 : index
      %17 = vector.load %arg6[%c0_16, %c0_17] : memref<160x128xf32, #tpu.memory_space<vmem>>, vector<160x128xf32>
      %18 = arith.subf %15, %17 : vector<160x128xf32>
      %c128_i32 = arith.constant 128 : i32
      %19 = arith.muli %arg1, %c128_i32 : i32
      %20 = tpu.iota {dimensions = array<i32: 1>} : vector<1x128xi32>
      %21 = vector.broadcast %19 : i32 to vector<1x128xi32>
      %22 = arith.addi %21, %20 : vector<1x128xi32>
      %c200_i32 = arith.constant 200 : i32
      %23 = vector.broadcast %c200_i32 : i32 to vector<1x128xi32>
      %24 = arith.cmpi slt, %22, %23 : vector<1x128xi32>
      %cst_18 = arith.constant 0.000000e+00 : f32
      %25 = vector.shape_cast %24 : vector<1x128xi1> to vector<1x128xi1>
      %26 = vector.broadcast %25 : vector<1x128xi1> to vector<160x128xi1>
      %27 = vector.broadcast %cst_18 : f32 to vector<160x128xf32>
      %28 = arith.select %26, %18, %27 : vector<160x128xi1>, vector<160x128xf32>
      %29 = arith.mulf %28, %28 : vector<160x128xf32>
      %30 = vector.shape_cast %29 : vector<160x128xf32> to vector<1x160x128xf32>
      %cst_19 = arith.constant dense<0.000000e+00> : vector<1xf32>
      %31 = vector.multi_reduction <add>, %30, %cst_19 [1, 2] : vector<1x160x128xf32> to vector<1xf32>
      %32 = vector.shape_cast %31 : vector<1xf32> to vector<1x1x1xf32>
      %33 = vector.extract %32[0, 0, 0] : f32 from vector<1x1x1xf32>
      %34 = vector.broadcast %33 : f32 to vector<8x128xf32>
      %c0_20 = arith.constant 0 : index
      %c0_21 = arith.constant 0 : index
      %35 = vector.load %arg7[%c0_20, %c0_21] : memref<8x128xf32, #tpu.memory_space<vmem>>, vector<8x128xf32>
      tpu.vector_store %arg7[%c0_20, %c0_21], %34 {strides = array<i32>} : memref<8x128xf32, #tpu.memory_space<vmem>>, vector<8x128xf32>,
    } else {
    }
    return
  }
  func.func @transform_0(%arg0: i32, %arg1: i32, %arg2: i32) -> (i32, i32) {
    %c0_i32 = arith.constant 0 : i32
    return %arg0, %arg2 : i32, i32
  }
  func.func @transform_1(%arg0: i32, %arg1: i32, %arg2: i32) -> (i32, i32) {
    %c0_i32 = arith.constant 0 : i32
    return %arg2, %arg1 : i32, i32
  }
  func.func @transform_2(%arg0: i32, %arg1: i32, %arg2: i32) -> (i32, i32) {
    %c0_i32 = arith.constant 0 : i32
    %c0_i32_0 = arith.constant 0 : i32
    return %c0_i32, %arg1 : i32, i32
  }
  func.func @transform_3(%arg0: i32, %arg1: i32, %arg2: i32) -> (i32, i32) {
    %c0_i32 = arith.constant 0 : i32
    return %arg0, %arg1 : i32, i32
  }
  func.func @transform_4(%arg0: i32, %arg1: i32, %arg2: i32) -> (i32, i32) {
    %c0_i32 = arith.constant 0 : i32
    return %arg0, %arg1 : i32, i32
  }
  func.func @transform_5(%arg0: i32, %arg1: i32, %arg2: i32) -> (i32, i32) {
    %c0_i32 = arith.constant 0 : i32
    return %arg0, %arg1 : i32, i32
  }
}

</mosaic_0001>

<bundles_post_ra>
// kernel: tpu_custom_call.1
= control target key start
LH: loop header
LB: loop body
LE: loop exit
PB: predicated region body
PF: predicated region fallthrough
CT: control target
= control target key end

     0   :  { %11 = vsyncpa [#allocation3], 0  ;;  %s2228_s0 = inlined_call_operand.hbm [shape: f32[160,384], index: 0, kind: input, shape index: {}]   ;;  %s2229_s1 = inlined_call_operand.hbm [shape: f32[384,256], index: 1, kind: input, shape index: {}]   ;;  %s2230_s2 = inlined_call_operand.vmem [shape: f32[1,256], index: 2, kind: input, shape index: {}]   ;;  %s2231_s3 = inlined_call_operand.hbm [shape: f32[160,256], index: 3, kind: input, shape index: {}]   ;;  %s2232_s4 = inlined_call_operand.hbm [shape: f32[8,256], index: 4, kind: output, shape index: {0}]   ;;  %s2233_s5 = inlined_call_operand.hbm [shape: f32[160,256], index: 5, kind: output, shape index: {1}]  }
   0x1   :  { %12 = vsyncpa [#allocation6], 0 }
   0x2   :  { %14 = vsyncpa [#allocation6 + $0x1], 0 }
   0x3   :  { %15 = vsyncpa [#allocation4], 0 }
   0x4   :  { %17 = vsyncpa [#allocation4 + $0x1], 0 }
   0x5   :  { %18 = vsyncpa [#allocation10], 0 }
   0x6   :  { %20 = vsyncpa [#allocation10 + $0x1], 0  ;;  %s1740_s18 = smov 0   ;;  %s1742_s19 = smov 0  }
   0x7   :  { %s1744_s20 = smov 0   ;;  %s1746_s21 = smov 0  }
   0x8   :  { %s1748_s22 = smov 0   ;;  %s1750_s23 = smov 0  }
   0x9 LB: > { %s41_s24 = sadd.s32 1, %s1690_s22  ;;  %s82_s25 = sadd.s32 1, %s1682_s20  ;;  %s1694_s23 = sphi %s1750_s23, %s26_s23   ;;  %s1690_s22 = sphi %s1748_s22, %s2253_s22   ;;  %s1686_s21 = sphi %s1746_s21, %s2252_s21   ;;  %s1682_s20 = sphi %s1744_s20, %s2251_s20   ;;  %s1678_s19 = sphi %s1742_s19, %s2250_s19   ;;  %s1674_s18 = sphi %s1740_s18, %s2249_s18  }
   0xa   : > { %p43_p0 = scmp.ge.s32.totalorder %s41_s24, 2  ;;  %p89_p1 = scmp.ne.s32.totalorder %s1682_s20, %s1678_s19 }
   0xb   : > { %p90_p2 = scmp.eq.s32.totalorder %s1694_s23, 0  ;;  %p1437_p5 = scmp.lt.s32.totalorder %s1694_s23, 2 }
   0xc   : > { %s2255_s24 = smov (%p43_p0, %s41_s24), 0  ;;  %s248_s27 = sand.u32 1, %s1694_s23  }
   0xd   : > { %p91_p4 = por %p90_p2, %p89_p1  ;;  %s78_s26 = ssub.s32 %s1690_s22, %s2255_s24 }
   0xe   : > { %p80_p6 = scmp.eq.s32.totalorder %s78_s26, 0  ;;  %s250_s28 = sand.u32 1, %s1682_s20  }
   0xf   : > { %s1290_s29 = sshll.u32 %s1690_s22, 7  ;;  %s1400_s6 = smul.u32 384, %s250_s28 }
  0x10   : > { %s1788_s30 = scalar_select %p80_p6, %s1682_s20, %s82_s25  }
  0x11   : > { %s260_s9 = scalar_lea.hbm %s2229_s1, %s1290_s29  ;;  %p1797_p7 = pnand %p1437_p5, %p91_p4 }
  0x12   : > { %s252_s11 = scalar_lea.vmem [#allocation5], %s1400_s6  ;;  %s1801_s13 = scalar_lea.sflag [#allocation6], %s248_s27 }
  0x13   : > { %s261_s12 = sshll.u32 %s252_s11, 4  ;;  %p1500_p8 = pneg %p1797_p7  ;;  %s262_s12 = int_to_ptr.vmem [resolvable:$true] %s261_s12 }
  0x14   : > { %s1511_s14 = scalar_lea.vmem %s262_s12, 6144  ;;  %s1696_s15 = smov [#allocation5]  }
  0x15   : > { %p1512_p9 = scmp.ne.s32.totalorder %s262_s12, %s1511_s14  ;;  %s1516_s16 = sshll.u32 %s1696_s15, 4  ;;  %s1517_s16 = int_to_ptr.vmem [resolvable:$false] %s1516_s16 }
  0x16   : > { %s1518_s17 = scalar_lea.vmem %s1517_s16, 12288  ;;  %p1519_p12 = scmp.lt.s32.totalorder %s262_s12, %s1517_s16 }
  0x17   : > { %p1514_p10 = pnand %p1512_p9, %p1500_p8  ;;  %p1520_p13 = scmp.lt.s32.totalorder %s1518_s17, %s1511_s14 }
  0x19   : > { %p1515_p11 = pneg %p1514_p10  ;;  %p1521_p0 = por %p1520_p13, %p1519_p12 }
  0x1b   : > { %p1522_p2 = pnand %p1521_p0, %p1515_p11 }
  0x1d   : > { %1525 = shalt.err (!%p1522_p2)
}
  0x1e   : > { %s2234_s25 = smov 256   ;;  %s1698_s26 = smov 128  }
  0x1f   : > { %s1699_s27 = smov 8   ;;  %s1401_s6 = smul.u32 160, %s250_s28 }
  0x20   : > { %1425 = dma.hbm_to_vmem [thread:$0]  (!%p1797_p7), %s260_s9, 6144, %s262_s12, %s1801_s13, %s2234_s25, %s1698_s26, %s1699_s27  }
  0x21   : > { %s1821_s11 = scalar_lea.hbm %s2231_s3, %s1290_s29  ;;  %s1824_s14 = sadd.s32 4294967295, %s1694_s23  }
  0x22   : > { %s1286_s15 = sadd.s32 4294967294, %s1694_s23   ;;  %p95_p4 = scmp.ne.s32.totalorder %s1678_s19, %s1674_s18 }
  0x23   : > { %p2235_p5 = scmp.eq.s32.totalorder %s1824_s14, 0  ;;  %p175_p6 = scmp.eq.s32.totalorder %s1824_s14, 1 }
  0x24   : > { %p181_p9 = scmp.eq.s32.totalorder %s1286_s15, 1  ;;  %p1287_p11 = scmp.ge.s32.totalorder %s1694_s23, 1 }
  0x25   : > { %p1833_p10 = por %p2235_p5, %p95_p4  ;;  %p1841_p12 = por %p175_p6, %p89_p1 }
  0x26   : > { %p1845_p13 = por %p181_p9, %p95_p4  ;;  %p216_p0 = scmp.lt.s32.totalorder %s1694_s23, 3 }
  0x27   : > { %s2239_s29 = scalar_select %p1841_p12, 1, 0 }
  0x28   : > { %s2240_s9 = scalar_select %p1845_p13, 1, 0 }
  0x29   : > { %s281_s12 = scalar_lea.vmem [#allocation7], %s1401_s6  ;;  %p1850_p2 = pnand %p1287_p11, %p216_p0 }
  0x2a   : > { %s290_s16 = sshll.u32 %s281_s12, 4  ;;  %s1700_s7 = smov [#allocation2]   ;;  %s291_s16 = int_to_ptr.vmem [resolvable:$true] %s290_s16 }
  0x2b   : > { %s234_s8 = sshll.u32 %s1700_s7, 4  ;;  %p1418_p1 = pneg %p1850_p2  ;;  %s1854_s8 = int_to_ptr.vmem [resolvable:$true] %s234_s8 }
  0x2c   : > { %s1539_s15 = scalar_lea.vmem %s291_s16, 2560  ;;  %s1701_s6 = smov [#allocation7]  }
  0x2d   : > { %p1540_p4 = scmp.ne.s32.totalorder %s291_s16, %s1539_s15  ;;  %s1544_s12 = sshll.u32 %s1701_s6, 4  ;;  %s1545_s12 = int_to_ptr.vmem [resolvable:$false] %s1544_s12 }
  0x2e   : > { %s1546_s25 = scalar_lea.vmem %s1545_s12, 5120  ;;  %p1547_p11 = scmp.lt.s32.totalorder %s291_s16, %s1545_s12 }
  0x2f   : > { %p1542_p6 = pnand %p1540_p4, %p1500_p8  ;;  %p1548_p0 = scmp.lt.s32.totalorder %s1546_s25, %s1539_s15 }
  0x31   : > { %p1543_p9 = pneg %p1542_p6  ;;  %p1549_p3 = por %p1548_p0, %p1547_p11 }
  0x33   : > { %p1550_p5 = pnand %p1549_p3, %p1543_p9 }
  0x35   : > { %1553 = shalt.err (!%p1550_p5)
}
  0x36   : > { %s2242_s7 = smov 256   ;;  %p2243_p8 = scmp.eq.s32.totalorder %s1824_s14, 0 }
  0x37   : > { %1428 = dma.hbm_to_vmem [thread:$0]  (!%p1797_p7), %s1821_s11, 2560, %s291_s16, %s1801_s13, %s2242_s7, %s1698_s26, %s1699_s27  }
  0x38   : > { %p1419_p4 = pnand %p1418_p1, %p2243_p8  ;;  %s1565_s25 = scalar_lea.vmem %s1854_s8, 7680 }
  0x39   : > { %p1566_p3 = scmp.ne.s32.totalorder %s1854_s8, %s1565_s25  ;;  %p1573_p11 = scmp.lt.s32.totalorder %s1854_s8, %s1854_s8 }
  0x3a   : > { %p1556_p6 = pneg %p1419_p4  ;;  %p1574_p0 = scmp.lt.s32.totalorder %s1565_s25, %s1565_s25 }
  0x3c   : > { %p1568_p5 = pnand %p1566_p3, %p1556_p6  ;;  %p1575_p13 = por %p1574_p0, %p1573_p11 }
  0x3e   : > { %p1569_p9 = pneg %p1568_p5 }
  0x40   : > { %p1576_p12 = pnand %p1575_p13, %p1569_p9 }
  0x42   : > { %1579 = shalt.err (!%p1576_p12)
}
  0x43   : > { %s1702_s10 = smov 384   ;;  %s1703_s15 = smov 24  }
  0x44   : > { %1421 = dma.hbm_to_vmem [thread:$0]  (!%p1419_p4), %s2228_s0, 7680, %s1854_s8, [#allocation3], %s1702_s10, %s1702_s10, %s1703_s15  }
  0x45   : > { %302 = sbr.rel (%p1850_p2) target bundleno = 639 (0x27f), region = 36  ;;  %p2244_p7 = scmp.eq.s32.totalorder (!%p1850_p2), %s1824_s14, 0 }
  0x4a   : > { %1657 = dma.done.wait (%p2244_p7), [#allocation3], 7680   ;;  %p2245_p1 = pmov %p2244_p7 }
  0x4b   : > { %s308_s26 = sand.u32 1, %s1824_s14   ;;  %s1889_s27 = sand.u32 1, %s1678_s19  }
  0x4c   : > { %1659 = vsyncadd (%p2245_p1), [#allocation3], 4294959616  ;;  %s1402_s11 = smul.u32 384, %s1889_s27  ;;  %s309_s16 = scalar_lea.sflag [#allocation6], %s308_s26 }
  0x4e   : > { %s1892_s12 = scalar_lea.vmem [#allocation5], %s1402_s11 }
  0x4f   : > { %1661 = dma.done.wait (%p1833_p10), %s309_s16, 8704  }
  0x50   : > { %1663 = vsyncadd (%p1833_p10), %s309_s16, 4294958592  ;;  %v1704_v0 = vmov 0.0   ;;  %v488_v1 = vld [vmem:[%s1892_s12 + $0x78] sm:$0xff]  ;;  %v487_v2 = vld [vmem:[%s1892_s12 + $0x70] sm:$0xff]  ;;  %p364_p10 = scmp.lt.s32.totalorder %s1686_s21, 1  ;;  %s1403_s7 = smul.u32 160, %s1889_s27 }
  0x51   : > { %521 = vmatprep.subr.mxu0 %v1704_v0  ;;  %v486_v3 = vld [vmem:[%s1892_s12 + $0x68] sm:$0xff]  ;;  %v485_v4 = vld [vmem:[%s1892_s12 + $0x60] sm:$0xff]  ;;  %v520_v5 = vld [vmem:[%s1892_s12 + $0x178] sm:$0xff]  ;;  %s2029_s10 = sshll.u32 %s1686_s21, 7  ;;  %s1085_s11 = scalar_lea.sflag [#allocation10], %s1889_s27 }
  0x52   : > { %522 = vmatpush1.msra.mxu0 %v488_v1  ;;  %v519_v6 = vld [vmem:[%s1892_s12 + $0x170] sm:$0xff]  ;;  %v484_v7 = vld [vmem:[%s1892_s12 + $0x58] sm:$0xff]  ;;  %1338 = vmatprep.subr.mxu1 %v520_v5  ;;  %v518_v8 = vld [vmem:[%s1892_s12 + $0x168] sm:$0xff]  ;;  %s365_s14 = scalar_select %p364_p10, %s1686_s21, 1 }
  0x53   : > { %523 = vmatprep.subr.mxu0 %v1704_v0  ;;  %1339 = vmatpush3.msra.mxu1 %v520_v5  ;;  %v483_v9 = vld [vmem:[%s1892_s12 + $0x50] sm:$0xff]  ;;  %v517_v10 = vld [vmem:[%s1892_s12 + $0x160] sm:$0xff]  ;;  %v482_v11 = vld [vmem:[%s1892_s12 + $0x48] sm:$0xff]  ;;  %s1991_s25 = scalar_lea.vmem [#allocation9], %s1403_s7  ;;  %s2039_s15 = scalar_lea.vmem [#allocation7], %s1403_s7 }
  0x54   : > { %524 = vmatpush1.msra.mxu0 %v487_v2  ;;  %1340 = vmatprep.subr.mxu1 %v519_v6  ;;  %v516_v12 = vld [vmem:[%s1892_s12 + $0x158] sm:$0xff]  ;;  %v481_v13 = vld [vmem:[%s1892_s12 + $0x40] sm:$0xff]  ;;  %v515_v14 = vld [vmem:[%s1892_s12 + $0x150] sm:$0xff]  ;;  %s366_s8 = scalar_lea.vmem %s2230_s2, %s365_s14  ;;  %s1115_s21 = sshll.u32 %s1991_s25, 4  ;;  %s2156_s21 = int_to_ptr.vmem [resolvable:$true] %s1115_s21 }
  0x55   : > { %525 = vmatprep.subr.mxu0 %v1704_v0  ;;  %1341 = vmatpush3.msra.mxu1 %v519_v6  ;;  %v480_v15 = vld [vmem:[%s1892_s12 + $0x38] sm:$0xff]  ;;  %v514_v16 = vld [vmem:[%s1892_s12 + $0x148] sm:$0xff]  ;;  %v479_v17 = vld [vmem:[%s1892_s12 + $0x30] sm:$0xff]  ;;  %s2154_s26 = scalar_lea.hbm %s2233_s5, %s2029_s10  ;;  %s1580_s16 = scalar_lea.vmem %s2156_s21, 2560 }
  0x56   : > { %526 = vmatpush1.msra.mxu0 %v486_v3  ;;  %1342 = vmatprep.subr.mxu1 %v518_v8  ;;  %v513_v18 = vld [vmem:[%s1892_s12 + $0x140] sm:$0xff]  ;;  %v478_v19 = vld [vmem:[%s1892_s12 + $0x28] sm:$0xff]  ;;  %v512_v20 = vld [vmem:[%s1892_s12 + $0x138] sm:$0xff]  ;;  %p1581_p12 = scmp.ne.s32.totalorder %s2156_s21, %s1580_s16  ;;  %p2246_p13 = scmp.ne.s32.totalorder %s2239_s29, 0 }
  0x57   : > { %527 = vmatprep.subr.mxu0 %v1704_v0  ;;  %1343 = vmatpush3.msra.mxu1 %v518_v8  ;;  %v477_v21 = vld [vmem:[%s1892_s12 + $0x20] sm:$0xff]  ;;  %v511_v22 = vld [vmem:[%s1892_s12 + $0x130] sm:$0xff]  ;;  %v476_v23 = vld [vmem:[%s1892_s12 + $0x18] sm:$0xff] }
  0x58   : > { %528 = vmatpush1.msra.mxu0 %v485_v4  ;;  %1344 = vmatprep.subr.mxu1 %v517_v10  ;;  %v510_v24 = vld [vmem:[%s1892_s12 + $0x128] sm:$0xff]  ;;  %v475_v25 = vld [vmem:[%s1892_s12 + $0x10] sm:$0xff]  ;;  %v509_v26 = vld [vmem:[%s1892_s12 + $0x120] sm:$0xff]  ;;  %p1582_p2 = pnand %p1581_p12, %p2246_p13 }
  0x59   : > { %529 = vmatprep.subr.mxu0 %v1704_v0  ;;  %1345 = vmatpush3.msra.mxu1 %v517_v10  ;;  %v474_v27 = vld [vmem:[%s1892_s12 + $0x8] sm:$0xff]  ;;  %v508_v28 = vld [vmem:[%s1892_s12 + $0x118] sm:$0xff]  ;;  %v473_v29 = vld [vmem:[%s1892_s12] sm:$0xff] }
  0x5a   : > { %530 = vmatpush1.msra.mxu0 %v484_v7  ;;  %1346 = vmatprep.subr.mxu1 %v516_v12  ;;  %v507_v30 = vld [vmem:[%s1892_s12 + $0x110] sm:$0xff]  ;;  %v504_v31 = vld [vmem:[%s1892_s12 + $0xf8] sm:$0xff]  ;;  %v506_v32 = vld [vmem:[%s1892_s12 + $0x108] sm:$0xff]  ;;  %p1583_p8 = pneg %p1582_p2 }
  0x5b   : > { %531 = vmatprep.subr.mxu0 %v1704_v0  ;;  %1347 = vmatpush3.msra.mxu1 %v516_v12  ;;  %v503_v33 = vld [vmem:[%s1892_s12 + $0xf0] sm:$0xff]  ;;  %v505_v34 = vld [vmem:[%s1892_s12 + $0x100] sm:$0xff]  ;;  %v502_v35 = vld [vmem:[%s1892_s12 + $0xe8] sm:$0xff] }
  0x5c   : > { %532 = vmatpush1.msra.mxu0 %v483_v9  ;;  %1348 = vmatprep.subr.mxu1 %v515_v14  ;;  %v415_v36 = vld [vmem:[#allocation2 + $0x10] sm:$0xff]  ;;  %v501_v37 = vld [vmem:[%s1892_s12 + $0xe0] sm:$0xff]  ;;  %v418_v38 = vld [vmem:[#allocation2 + $0x28] sm:$0xff] }
  0x5d   : > { %533 = vmatprep.subr.mxu0 %v1704_v0  ;;  %1349 = vmatpush3.msra.mxu1 %v515_v14  ;;  %v414_v39 = vld [vmem:[#allocation2 + $0x8] sm:$0xff]  ;;  %v500_v40 = vld [vmem:[%s1892_s12 + $0xd8] sm:$0xff]  ;;  %v421_v41 = vld [vmem:[#allocation2 + $0x40] sm:$0xff] }
  0x5e   : > { %534 = vmatpush1.msra.mxu0 %v482_v11  ;;  %1350 = vmatprep.subr.mxu1 %v514_v16  ;;  %v499_v42 = vld [vmem:[%s1892_s12 + $0xd0] sm:$0xff]  ;;  %v424_v43 = vld [vmem:[#allocation2 + $0x58] sm:$0xff]  ;;  %v498_v45 = vld [vmem:[%s1892_s12 + $0xc8] sm:$0xff] }
  0x5f   : > { %535 = vmatprep.subr.mxu0 %v1704_v0  ;;  %1351 = vmatpush3.msra.mxu1 %v514_v16  ;;  %v427_v44 = vld [vmem:[#allocation2 + $0x70] sm:$0xff]  ;;  %v497_v46 = vld [vmem:[%s1892_s12 + $0xc0] sm:$0xff]  ;;  %v430_v47 = vld [vmem:[#allocation2 + $0x88] sm:$0xff] }
  0x60   : > { %536 = vmatpush1.msra.mxu0 %v481_v13  ;;  %1352 = vmatprep.subr.mxu1 %v513_v18  ;;  %v433_v48 = vld [vmem:[#allocation2 + $0xa0] sm:$0xff]  ;;  %v496_v49 = vld [vmem:[%s1892_s12 + $0xb8] sm:$0xff]  ;;  %v495_v50 = vld [vmem:[%s1892_s12 + $0xb0] sm:$0xff] }
  0x61   : > { %537 = vmatprep.subr.mxu0 %v1704_v0  ;;  %1353 = vmatpush3.msra.mxu1 %v513_v18  ;;  %v436_v51 = vld [vmem:[#allocation2 + $0xb8] sm:$0xff]  ;;  %v439_v52 = vld [vmem:[#allocation2 + $0xd0] sm:$0xff]  ;;  %v494_v53 = vld [vmem:[%s1892_s12 + $0xa8] sm:$0xff] }
  0x62   : > { %538 = vmatpush1.msra.mxu0 %v480_v15  ;;  %1354 = vmatprep.subr.mxu1 %v512_v20  ;;  %v493_v54 = vld [vmem:[%s1892_s12 + $0xa0] sm:$0xff]  ;;  %v442_v55 = vld [vmem:[#allocation2 + $0xe8] sm:$0xff]  ;;  %v492_v57 = vld [vmem:[%s1892_s12 + $0x98] sm:$0xff] }
  0x63   : > { %539 = vmatprep.subr.mxu0 %v1704_v0  ;;  %1355 = vmatpush3.msra.mxu1 %v512_v20  ;;  %v445_v56 = vld [vmem:[#allocation2 + $0x100] sm:$0xff]  ;;  %v491_v58 = vld [vmem:[%s1892_s12 + $0x90] sm:$0xff]  ;;  %v448_v59 = vld [vmem:[#allocation2 + $0x118] sm:$0xff] }
  0x64   : > { %540 = vmatpush1.msra.mxu0 %v479_v17  ;;  %1356 = vmatprep.subr.mxu1 %v511_v22  ;;  %v451_v60 = vld [vmem:[#allocation2 + $0x130] sm:$0xff]  ;;  %v490_v61 = vld [vmem:[%s1892_s12 + $0x88] sm:$0xff]  ;;  %v489_v62 = vld [vmem:[%s1892_s12 + $0x80] sm:$0xff]  ;;  %s1705_s12 = smov [#allocation9]  }
  0x65   : > { %541 = vmatprep.subr.mxu0 %v1704_v0  ;;  %1357 = vmatpush3.msra.mxu1 %v511_v22  ;;  %v454_v63 = vld [vmem:[#allocation2 + $0x148] sm:$0xff]  ;;  %v413_v1 = vld [vmem:[#allocation2] sm:$0xff]  ;;  %v460_v4 = vld [vmem:[#allocation2 + $0x178] sm:$0xff]  ;;  %s1584_s14 = sshll.u32 %s1705_s12, 4  ;;  %s1585_s14 = int_to_ptr.vmem [resolvable:$false] %s1584_s14 }
  0x66   : > { %542 = vmatpush1.msra.mxu0 %v478_v19  ;;  %1358 = vmatprep.subr.mxu1 %v510_v24  ;;  %v457_v2 = vld [vmem:[#allocation2 + $0x160] sm:$0xff]  ;;  %v416_v5 = vld [vmem:[#allocation2 + $0x18] sm:$0xff]  ;;  %v463_v6 = vld [vmem:[#allocation2 + $0x190] sm:$0xff]  ;;  %s1586_s28 = scalar_lea.vmem %s1585_s14, 5120  ;;  %p1587_p4 = scmp.lt.s32.totalorder %s2156_s21, %s1585_s14 }
  0x67   : > { %543 = vmatprep.subr.mxu0 %v1704_v0  ;;  %1359 = vmatpush3.msra.mxu1 %v510_v24  ;;  %v417_v3 = vld [vmem:[#allocation2 + $0x20] sm:$0xff]  ;;  %v420_v7 = vld [vmem:[#allocation2 + $0x38] sm:$0xff]  ;;  %v466_v8 = vld [vmem:[#allocation2 + $0x1a8] sm:$0xff]  ;;  %p1588_p6 = scmp.lt.s32.totalorder %s1586_s28, %s1580_s16 }
  0x68   : > { %544 = vmatpush1.msra.mxu0 %v477_v21  ;;  %1360 = vmatprep.subr.mxu1 %v509_v26  ;;  %v419_v9 = vld [vmem:[#allocation2 + $0x30] sm:$0xff]  ;;  %v469_v10 = vld [vmem:[#allocation2 + $0x1c0] sm:$0xff]  ;;  %v422_v12 = vld [vmem:[#allocation2 + $0x48] sm:$0xff] }
  0x69   : > { %545 = vmatprep.subr.mxu0 %v1704_v0  ;;  %1361 = vmatpush3.msra.mxu1 %v509_v26  ;;  %v423_v11 = vld [vmem:[#allocation2 + $0x50] sm:$0xff]  ;;  %v426_v13 = vld [vmem:[#allocation2 + $0x68] sm:$0xff]  ;;  %v425_v14 = vld [vmem:[#allocation2 + $0x60] sm:$0xff]  ;;  %p1589_p3 = por %p1588_p6, %p1587_p4 }
  0x6a   : > { %546 = vmatpush1.msra.mxu0 %v476_v23  ;;  %1362 = vmatprep.subr.mxu1 %v508_v28  ;;  %v429_v15 = vld [vmem:[#allocation2 + $0x80] sm:$0xff]  ;;  %v428_v16 = vld [vmem:[#allocation2 + $0x78] sm:$0xff]  ;;  %v431_v18 = vld [vmem:[#allocation2 + $0x90] sm:$0xff] }
  0x6b   : > { %547 = vmatprep.subr.mxu0 %v1704_v0  ;;  %1363 = vmatpush3.msra.mxu1 %v508_v28  ;;  %v432_v17 = vld [vmem:[#allocation2 + $0x98] sm:$0xff]  ;;  %v435_v19 = vld [vmem:[#allocation2 + $0xb0] sm:$0xff]  ;;  %v434_v20 = vld [vmem:[#allocation2 + $0xa8] sm:$0xff]  ;;  %p1590_p5 = pnand %p1589_p3, %p1583_p8 }
  0x6c   : > { %548 = vmatpush1.msra.mxu0 %v475_v25  ;;  %1364 = vmatprep.subr.mxu1 %v507_v30  ;;  %v438_v21 = vld [vmem:[#allocation2 + $0xc8] sm:$0xff]  ;;  %v437_v22 = vld [vmem:[#allocation2 + $0xc0] sm:$0xff]  ;;  %v440_v24 = vld [vmem:[#allocation2 + $0xd8] sm:$0xff] }
  0x6d   : > { %549 = vmatprep.subr.mxu0 %v1704_v0  ;;  %1365 = vmatpush3.msra.mxu1 %v507_v30  ;;  %v441_v23 = vld [vmem:[#allocation2 + $0xe0] sm:$0xff]  ;;  %v444_v25 = vld [vmem:[#allocation2 + $0xf8] sm:$0xff]  ;;  %v443_v26 = vld [vmem:[#allocation2 + $0xf0] sm:$0xff] }
  0x6e   : > { %550 = vmatpush1.msra.mxu0 %v474_v27  ;;  %1366 = vmatprep.subr.mxu1 %v506_v32  ;;  %v447_v27 = vld [vmem:[#allocation2 + $0x110] sm:$0xff]  ;;  %v446_v28 = vld [vmem:[#allocation2 + $0x108] sm:$0xff]  ;;  %v449_v30 = vld [vmem:[#allocation2 + $0x120] sm:$0xff] }
  0x6f   : > { %551 = vmatprep.subr.mxu0 %v1704_v0  ;;  %1367 = vmatpush3.msra.mxu1 %v506_v32  ;;  %v452_v32 = vld [vmem:[#allocation2 + $0x138] sm:$0xff] }
  0x70   : > { %552 = vmatpush1.msra.mxu0 %v473_v29  ;;  %1368 = vmatprep.subr.mxu1 %v505_v34  ;;  %v450_v29 = vld [vmem:[#allocation2 + $0x128] sm:$0xff] }
  0x71   : > { %553 = vmatprep.subr.mxu0 %v1704_v0  ;;  %1369 = vmatpush3.msra.mxu1 %v505_v34  ;;  %v455_v34 = vld [vmem:[#allocation2 + $0x150] sm:$0xff] }
  0x72   : > { %554 = vmatpush2.msra.mxu0 %v504_v31  ;;  %1370 = vmatprep.mubr.f32.mxu1 %v415_v36  ;;  %v453_v31 = vld [vmem:[#allocation2 + $0x140] sm:$0xff]  ;;  %v458_v36 = vld [vmem:[#allocation2 + $0x168] sm:$0xff] }
  0x73   : > { %555 = vmatprep.subr.mxu0 %v1704_v0  ;;  %1371 = vmatmul.mubr.f32.vlgmr.msra.gmra.mxu1 %v418_v38  ;;  %v461_v38 = vld [vmem:[#allocation2 + $0x180] sm:$0xff] }
  0x74   : > { %556 = vmatpush2.msra.mxu0 %v503_v33  ;;  %585 = vmatprep.mubr.f32.mxu0 %v414_v39  ;;  %v456_v33 = vld [vmem:[#allocation2 + $0x158] sm:$0xff]  ;;  %v465_v39 = vld [vmem:[#allocation2 + $0x1a0] sm:$0xff] }
  0x75   : > { %557 = vmatprep.subr.mxu0 %v1704_v0  ;;  %1373 = vmatprep.mubr.f32.mxu1 %v421_v41  ;;  %v468_v41 = vld [vmem:[#allocation2 + $0x1b8] sm:$0xff] }
  0x76   : > { %558 = vmatpush2.msra.mxu0 %v502_v35  ;;  %v459_v35 = vld [vmem:[#allocation2 + $0x170] sm:$0xff] }
  0x77   : > { %559 = vmatprep.subr.mxu0 %v1704_v0  ;;  %1374 = vmatmul.mubr.f32.gmra.mxu1 %v424_v43  ;;  %v471_v43 = vld [vmem:[#allocation2 + $0x1d0] sm:$0xff] }
  0x78   : > { %560 = vmatpush2.msra.mxu0 %v501_v37  ;;  %1376 = vmatprep.mubr.f32.mxu1 %v427_v44  ;;  %v462_v37 = vld [vmem:[#allocation2 + $0x188] sm:$0xff] }
  0x79   : > { %561 = vmatprep.subr.mxu0 %v1704_v0  ;;  %v470_v44 = vld [vmem:[#allocation2 + $0x1c8] sm:$0xff] }
  0x7a   : > { %562 = vmatpush2.msra.mxu0 %v500_v40  ;;  %v464_v40 = vld [vmem:[#allocation2 + $0x198] sm:$0xff] }
  0x7b   : > { %563 = vmatprep.subr.mxu0 %v1704_v0  ;;  %1377 = vmatmul.mubr.f32.gmra.mxu1 %v430_v47 }
  0x7c   : > { %564 = vmatpush2.msra.mxu0 %v499_v42  ;;  %1379 = vmatprep.mubr.f32.mxu1 %v433_v48  ;;  %v467_v42 = vld [vmem:[#allocation2 + $0x1b0] sm:$0xff] }
  0x7d   : > { %565 = vmatprep.subr.mxu0 %v1704_v0 }
  0x7e   : > { %566 = vmatpush2.msra.mxu0 %v498_v45 }
  0x7f   : > { %567 = vmatprep.subr.mxu0 %v1704_v0  ;;  %1380 = vmatmul.mubr.f32.gmra.mxu1 %v436_v51 }
  0x80   : > { %568 = vmatpush2.msra.mxu0 %v497_v46  ;;  %1382 = vmatprep.mubr.f32.mxu1 %v439_v52 }
  0x81   : > { %569 = vmatprep.subr.mxu0 %v1704_v0 }
  0x82   : > { %570 = vmatpush2.msra.mxu0 %v496_v49  ;;  %v1984_v49 = vld [vmem:[%s366_s8] ss:$0 sm:$0xff] }
  0x83   : > { %571 = vmatprep.subr.mxu0 %v1704_v0  ;;  %1383 = vmatmul.mubr.f32.gmra.mxu1 %v442_v55 }
  0x84   : > { %572 = vmatpush2.msra.mxu0 %v495_v50  ;;  %1385 = vmatprep.mubr.f32.mxu1 %v445_v56 }
  0x85   : > { %573 = vmatprep.subr.mxu0 %v1704_v0 }
  0x86   : > { %574 = vmatpush2.msra.mxu0 %v494_v53 }
  0x87   : > { %575 = vmatprep.subr.mxu0 %v1704_v0  ;;  %1386 = vmatmul.mubr.f32.gmra.mxu1 %v448_v59 }
  0x88   : > { %576 = vmatpush2.msra.mxu0 %v493_v54  ;;  %1388 = vmatprep.mubr.f32.mxu1 %v451_v60 }
  0x89   : > { %577 = vmatprep.subr.mxu0 %v1704_v0 }
  0x8a   : > { %578 = vmatpush2.msra.mxu0 %v492_v57 }
  0x8b   : > { %579 = vmatprep.subr.mxu0 %v1704_v0  ;;  %1389 = vmatmul.mubr.f32.gmra.mxu1 %v454_v63 }
  0x8c   : > { %580 = vmatpush2.msra.mxu0 %v491_v58  ;;  %1391 = vmatprep.mubr.f32.mxu1 %v457_v2 }
  0x8d   : > { %581 = vmatprep.subr.mxu0 %v1704_v0 }
  0x8e   : > { %582 = vmatpush2.msra.mxu0 %v490_v61 }
  0x8f   : > { %583 = vmatprep.subr.mxu0 %v1704_v0  ;;  %1392 = vmatmul.mubr.f32.gmra.mxu1 %v460_v4  ;;  %v472_v0 = vld [vmem:[#allocation2 + $0x1d8] sm:$0xff] }
  0x90   : > { %584 = vmatpush2.msra.mxu0 %v489_v62  ;;  %1394 = vmatprep.mubr.f32.mxu1 %v463_v6 }
  0x91   : > { %586 = vmatmul.mubr.f32.vlgmr.msra.gmra.mxu0 %v413_v1 }
  0x92   : > { %590 = vmatprep.mubr.f32.mxu0 %v417_v3 }
  0x93   : > { %1395 = vmatmul.mubr.f32.gmra.mxu1 %v466_v8 }
  0x94   : > { %1397 = vmatprep.mubr.f32.mxu1 %v469_v10 }
  0x95   : > { %591 = vmatmul.mubr.f32.gmra.mxu0 %v416_v5 }
  0x96   : > { %595 = vmatprep.mubr.f32.mxu0 %v420_v7 }
  0x97   : > { %1398 = vmatmul.mubr.f32.gmra.mxu1 %v472_v0 }
  0x99   : > { %596 = vmatmul.mubr.f32.gmra.mxu0 %v419_v9 }
  0x9a   : > { %600 = vmatprep.mubr.f32.mxu0 %v423_v11 }
  0x9d   : > { %601 = vmatmul.mubr.f32.gmra.mxu0 %v422_v12 }
  0x9e   : > { %605 = vmatprep.mubr.f32.mxu0 %v426_v13 }
  0xa1   : > { %606 = vmatmul.mubr.f32.gmra.mxu0 %v425_v14 }
  0xa2   : > { %610 = vmatprep.mubr.f32.mxu0 %v429_v15 }
  0xa5   : > { %611 = vmatmul.mubr.f32.gmra.mxu0 %v428_v16 }
  0xa6   : > { %615 = vmatprep.mubr.f32.mxu0 %v432_v17 }
  0xa9   : > { %616 = vmatmul.mubr.f32.gmra.mxu0 %v431_v18 }
  0xaa   : > { %620 = vmatprep.mubr.f32.mxu0 %v435_v19 }
  0xad   : > { %621 = vmatmul.mubr.f32.gmra.mxu0 %v434_v20 }
  0xae   : > { %625 = vmatprep.mubr.f32.mxu0 %v438_v21 }
  0xb1   : > { %626 = vmatmul.mubr.f32.gmra.mxu0 %v437_v22 }
  0xb2   : > { %630 = vmatprep.mubr.f32.mxu0 %v441_v23  ;;  %v1002_v23 = vlaneseq }
  0xb5   : > { %631 = vmatmul.mubr.f32.gmra.mxu0 %v440_v24 }
  0xb6   : > { %635 = vmatprep.mubr.f32.mxu0 %v444_v25 }
  0xb9   : > { %636 = vmatmul.mubr.f32.gmra.mxu0 %v443_v26 }
  0xba   : > { %640 = vmatprep.mubr.f32.mxu0 %v447_v27 }
  0xbd   : > { %641 = vmatmul.mubr.f32.gmra.mxu0 %v446_v28 }
  0xbe   : > { %645 = vmatprep.mubr.f32.mxu0 %v450_v29  ;;  %v1003_v29 = vand.u32 127, %v1002_v23 }
  0xc1   : > { %646 = vmatmul.mubr.f32.gmra.mxu0 %v449_v30 }
  0xc2   : > { %650 = vmatprep.mubr.f32.mxu0 %v453_v31  ;;  %v1004_v31 = vstv %s2029_s10 }
  0xc5   : > { %651 = vmatmul.mubr.f32.gmra.mxu0 %v452_v32 }
  0xc6   : > { %655 = vmatprep.mubr.f32.mxu0 %v456_v33 }
  0xc9   : > { %656 = vmatmul.mubr.f32.gmra.mxu0 %v455_v34  ;;  %v962_v34 = vld [vmem:[%s2039_s15 + $0x8] sm:$0xff] }
  0xca   : > { %660 = vmatprep.mubr.f32.mxu0 %v459_v35 }
  0xcd   : > { %661 = vmatmul.mubr.f32.gmra.mxu0 %v458_v36 }
  0xce   : > { %665 = vmatprep.mubr.f32.mxu0 %v462_v37  ;;  %v961_v37 = vld [vmem:[%s2039_s15] sm:$0xff] }
  0xd1   : > { %666 = vmatmul.mubr.f32.gmra.mxu0 %v461_v38  ;;  %v2045_v38 = vadd.s32 %v1004_v31, %v1003_v29 }
  0xd2   : > { %670 = vmatprep.mubr.f32.mxu0 %v465_v39  ;;  %v963_v39 = vld [vmem:[%s2039_s15 + $0x10] sm:$0xff] }
  0xd3   : > { %vm1006_vm0 = vcmp.lt.s32.totalorder %v2045_v38, 200 }
  0xd5   : > { %671 = vmatmul.mubr.f32.gmra.mxu0 %v464_v40 }
  0xd6   : > { %675 = vmatprep.mubr.f32.mxu0 %v468_v41 }
  0xd9   : > { %676 = vmatmul.mubr.f32.gmra.mxu0 %v467_v42 }
  0xda   : > { %680 = vmatprep.mubr.f32.mxu0 %v471_v43 }
  0xdd   : > { %681 = vmatmul.mubr.f32.gmra.mxu0 %v470_v44  ;;  %v964_v44 = vld [vmem:[%s2039_s15 + $0x18] sm:$0xff] }
 0x133   : > { %v1372_v45 = vpop.f32.mrf.mxu1 }
 0x135   : > { %v752_v46 = vpop.f32.mrf.mxu1 }
 0x137   : > { %v1375_v51 = vpop.f32.mrf.mxu1 }
 0x139   : > { %v762_v56 = vpop.f32.mrf.mxu1 }
 0x13b   : > { %v1378_v61 = vpop.f32.mrf.mxu1 }
 0x13d   : > { %v772_v3 = vpop.f32.mrf.mxu1 }
 0x13f   : > { %v1381_v8 = vpop.f32.mrf.mxu1 }
 0x141   : > { %v782_v12 = vpop.f32.mrf.mxu1 }
 0x143   : > { %v1384_v17 = vpop.f32.mrf.mxu1 }
 0x145   : > { %v792_v22 = vpop.f32.mrf.mxu1 }
 0x147   : > { %v1387_v28 = vpop.f32.mrf.mxu1 }
 0x149   : > { %v802_v36 = vpop.f32.mrf.mxu1 }
 0x151   : > { %v587_v47 = vpop.f32.mrf.mxu0 }
 0x152   : > { %v753_v48 = vadd.f32 %v752_v46, %v587_v47  ;;  %v1390_v46 = vpop.f32.mrf.mxu1 }
 0x153   : > { %v589_v50 = vpop.f32.mrf.mxu0 }
 0x154   : > { %v1987_v53 = vadd.f32 %v1984_v49, %v753_v48  ;;  %v965_v50 = vld [vmem:[%s2039_s15 + $0x20] sm:$0xff] }
 0x155   : > { %v592_v52 = vpop.f32.mrf.mxu0 }
 0x156   : > { %v758_v54 = vadd.f32 %v1372_v45, %v592_v52  ;;  %941 = vst [vmem:[%s1991_s25] sm:$0xff] %v1987_v53  ;;  %v981_v47 = vsub.f32 %v1987_v53, %v961_v37  ;;  %v966_v53 = vld [vmem:[%s2039_s15 + $0x28] sm:$0xff] }
 0x157   : > { %v594_v55 = vpop.f32.mrf.mxu0 }
 0x158   : > { %v1996_v58 = vadd.f32 %v1984_v49, %v758_v54 }
 0x159   : > { %v597_v57 = vpop.f32.mrf.mxu0 }
 0x15a   : > { %v763_v59 = vadd.f32 %v762_v56, %v597_v57  ;;  %942 = vst [vmem:[%s1991_s25 + $0x8] sm:$0xff] %v1996_v58  ;;  %v982_v41 = vsub.f32 %v1996_v58, %v962_v34  ;;  %v812_v58 = vpop.f32.mrf.mxu1 }
 0x15b   : > { %v599_v60 = vpop.f32.mrf.mxu0 }
 0x15c   : > { %v2001_v63 = vadd.f32 %v1984_v49, %v763_v59  ;;  %v1010_v52 = vsel %vm1006_vm0, %v982_v41, 0.0  ;;  %v1009_v59 = vsel %vm1006_vm0, %v981_v47, 0.0 }
 0x15d   : > { %v602_v62 = vpop.f32.mrf.mxu0 }
 0x15e   : > { %v768_v1 = vadd.f32 %v1375_v51, %v602_v62  ;;  %943 = vst [vmem:[%s1991_s25 + $0x10] sm:$0xff] %v2001_v63  ;;  %v983_v48 = vsub.f32 %v2001_v63, %v963_v39  ;;  %v1030_v62 = vmul.f32 %v1010_v52, %v1010_v52  ;;  %v967_v63 = vld [vmem:[%s2039_s15 + $0x30] sm:$0xff] }
 0x15f   : > { %v604_v2 = vpop.f32.mrf.mxu0 }
 0x160   : > { %v2006_v5 = vadd.f32 %v1984_v49, %v768_v1  ;;  %v1011_v60 = vsel %vm1006_vm0, %v983_v48, 0.0 }
 0x161   : > { %v607_v4 = vpop.f32.mrf.mxu0 }
 0x162   : > { %v773_v6 = vadd.f32 %v772_v3, %v607_v4  ;;  %944 = vst [vmem:[%s1991_s25 + $0x18] sm:$0xff] %v2006_v5  ;;  %v984_v54 = vsub.f32 %v2006_v5, %v964_v44 }
 0x163   : > { %v609_v7 = vpop.f32.mrf.mxu0 }
 0x164   : > { %v2011_v10 = vadd.f32 %v1984_v49, %v773_v6  ;;  %v1012_v2 = vsel %vm1006_vm0, %v984_v54, 0.0  ;;  %v1029_v6 = vmul.f32 %v1009_v59, %v1009_v59  ;;  %v1031_v7 = vmul.f32 %v1011_v60, %v1011_v60  ;;  %v975_v60 = vld [vmem:[%s2039_s15 + $0x70] sm:$0xff] }
 0x165   : > { %v612_v9 = vpop.f32.mrf.mxu0 }
 0x166   : > { %v778_v11 = vadd.f32 %v1378_v61, %v612_v9  ;;  %945 = vst [vmem:[%s1991_s25 + $0x20] sm:$0xff] %v2011_v10  ;;  %v985_v61 = vsub.f32 %v2011_v10, %v965_v50  ;;  %v1393_v10 = vpop.f32.mrf.mxu1 }
 0x167   : > { %v614_v0 = vpop.f32.mrf.mxu0 }
 0x168   : > { %v2016_v14 = vadd.f32 %v1984_v49, %v778_v11  ;;  %v1013_v11 = vsel %vm1006_vm0, %v985_v61, 0.0 }
 0x169   : > { %v617_v13 = vpop.f32.mrf.mxu0 }
 0x16a   : > { %v783_v15 = vadd.f32 %v782_v12, %v617_v13  ;;  %946 = vst [vmem:[%s1991_s25 + $0x28] sm:$0xff] %v2016_v14  ;;  %v986_v3 = vsub.f32 %v2016_v14, %v966_v53  ;;  %v1049_v12 = vadd.f32 %v1030_v62, %v1029_v6  ;;  %v1032_v13 = vmul.f32 %v1012_v2, %v1012_v2  ;;  %v969_v14 = vld [vmem:[%s2039_s15 + $0x40] sm:$0xff]  ;;  %v976_v6 = vld [vmem:[%s2039_s15 + $0x78] sm:$0xff] }
 0x16b   : > { %v619_v16 = vpop.f32.mrf.mxu0 }
 0x16c   : > { %v2021_v19 = vadd.f32 %v1984_v49, %v783_v15  ;;  %v1014_v16 = vsel %vm1006_vm0, %v986_v3, 0.0 }
 0x16d   : > { %v622_v18 = vpop.f32.mrf.mxu0  ;;  %v1034_v29 = vmul.f32 %v1014_v16, %v1014_v16 }
 0x16e   : > { %v788_v20 = vadd.f32 %v1381_v8, %v622_v18  ;;  %947 = vst [vmem:[%s1991_s25 + $0x30] sm:$0xff] %v2021_v19  ;;  %v968_v8 = vld [vmem:[%s2039_s15 + $0x38] sm:$0xff]  ;;  %v987_v0 = vsub.f32 %v2021_v19, %v967_v63  ;;  %v822_v19 = vpop.f32.mrf.mxu1 }
 0x16f   : > { %v624_v21 = vpop.f32.mrf.mxu0 }
 0x170   : > { %v2026_v25 = vadd.f32 %v1984_v49, %v788_v20  ;;  %v1050_v21 = vadd.f32 %v1049_v12, %v1031_v7 }
 0x171   : > { %v627_v24 = vpop.f32.mrf.mxu0 }
 0x172   : > { %v793_v26 = vadd.f32 %v792_v22, %v627_v24  ;;  %948 = vst [vmem:[%s1991_s25 + $0x38] sm:$0xff] %v2026_v25  ;;  %v1033_v22 = vmul.f32 %v1013_v11, %v1013_v11  ;;  %v970_v24 = vld [vmem:[%s2039_s15 + $0x48] sm:$0xff] }
 0x173   : > { %v629_v27 = vpop.f32.mrf.mxu0 }
 0x174   : > { %v2035_v32 = vadd.f32 %v1984_v49, %v793_v26  ;;  %v1015_v26 = vsel %vm1006_vm0, %v987_v0, 0.0  ;;  %v977_v0 = vld [vmem:[%s2039_s15 + $0x80] sm:$0xff] }
 0x175   : > { %v632_v30 = vpop.f32.mrf.mxu0  ;;  %v1035_v37 = vmul.f32 %v1015_v26, %v1015_v26  ;;  %v978_v26 = vld [vmem:[%s2039_s15 + $0x88] sm:$0xff] }
 0x176   : > { %v798_v33 = vadd.f32 %v1384_v17, %v632_v30  ;;  %949 = vst [vmem:[%s1991_s25 + $0x40] sm:$0xff] %v2035_v32  ;;  %v988_v17 = vsub.f32 %v2026_v25, %v968_v8  ;;  %v989_v27 = vsub.f32 %v2035_v32, %v969_v14  ;;  %v971_v30 = vld [vmem:[%s2039_s15 + $0x50] sm:$0xff]  ;;  %v972_v32 = vld [vmem:[%s2039_s15 + $0x58] sm:$0xff] }
 0x177   : > { %v634_v35 = vpop.f32.mrf.mxu0 }
 0x178   : > { %v2050_v42 = vadd.f32 %v1984_v49, %v798_v33  ;;  %v1016_v35 = vsel %vm1006_vm0, %v988_v17, 0.0 }
 0x179   : > { %v637_v40 = vpop.f32.mrf.mxu0 }
 0x17a   : > { %v803_v43 = vadd.f32 %v802_v36, %v637_v40  ;;  %950 = vst [vmem:[%s1991_s25 + $0x48] sm:$0xff] %v2050_v42  ;;  %v990_v34 = vsub.f32 %v2050_v42, %v970_v24  ;;  %v1396_v40 = vpop.f32.mrf.mxu1  ;;  %v1036_v42 = vmul.f32 %v1016_v35, %v1016_v35 }
 0x17b   : > { %v639_v45 = vpop.f32.mrf.mxu0 }
 0x17c   : > { %v2063_v55 = vadd.f32 %v1984_v49, %v803_v43  ;;  %v1017_v43 = vsel %vm1006_vm0, %v989_v27, 0.0  ;;  %v973_v45 = vld [vmem:[%s2039_s15 + $0x60] sm:$0xff]  ;;  %v832_v54 = vpop.f32.mrf.mxu1 }
 0x17d   : > { %v642_v51 = vpop.f32.mrf.mxu0 }
 0x17e   : > { %v808_v56 = vadd.f32 %v1387_v28, %v642_v51  ;;  %951 = vst [vmem:[%s1991_s25 + $0x50] sm:$0xff] %v2063_v55  ;;  %v1051_v28 = vadd.f32 %v1050_v21, %v1032_v13  ;;  %v991_v41 = vsub.f32 %v2063_v55, %v971_v30  ;;  %v1018_v51 = vsel %vm1006_vm0, %v990_v34, 0.0 }
 0x17f   : > { %v644_v57 = vpop.f32.mrf.mxu0  ;;  %v1037_v55 = vmul.f32 %v1017_v43, %v1017_v43  ;;  %v1038_v61 = vmul.f32 %v1018_v51, %v1018_v51 }
 0x180   : > { %v2078_v4 = vadd.f32 %v1984_v49, %v808_v56  ;;  %v1052_v36 = vadd.f32 %v1051_v28, %v1033_v22  ;;  %v974_v56 = vld [vmem:[%s2039_s15 + $0x68] sm:$0xff] }
 0x181   : > { %v647_v1 = vpop.f32.mrf.mxu0 }
 0x182   : > { %v813_v5 = vadd.f32 %v812_v58, %v647_v1  ;;  %952 = vst [vmem:[%s1991_s25 + $0x58] sm:$0xff] %v2078_v4  ;;  %v992_v50 = vsub.f32 %v2078_v4, %v972_v32  ;;  %v1019_v58 = vsel %vm1006_vm0, %v991_v41, 0.0 }
 0x183   : > { %v649_v9 = vpop.f32.mrf.mxu0  ;;  %v1039_v7 = vmul.f32 %v1019_v58, %v1019_v58 }
 0x184   : > { %v933_v18 = vadd.f32 %v1984_v49, %v813_v5  ;;  %v1020_v3 = vsel %vm1006_vm0, %v992_v50, 0.0  ;;  %v1399_v5 = vpop.f32.mrf.mxu1 }
 0x185   : > { %v652_v15 = vpop.f32.mrf.mxu0  ;;  %v1040_v12 = vmul.f32 %v1020_v3, %v1020_v3 }
 0x186   : > { %v818_v20 = vadd.f32 %v1390_v46, %v652_v15  ;;  %953 = vst [vmem:[%s1991_s25 + $0x60] sm:$0xff] %v933_v18  ;;  %v1053_v46 = vadd.f32 %v1052_v36, %v1034_v29  ;;  %v993_v57 = vsub.f32 %v933_v18, %v973_v45 }
 0x187   : > { %v654_v23 = vpop.f32.mrf.mxu0 }
 0x188   : > { %v934_v31 = vadd.f32 %v1984_v49, %v818_v20  ;;  %v1054_v53 = vadd.f32 %v1053_v46, %v1035_v37  ;;  %v842_v20 = vpop.f32.mrf.mxu1 }
 0x189   : > { %v657_v25 = vpop.f32.mrf.mxu0 }
 0x18a   : > { %v823_v33 = vadd.f32 %v822_v19, %v657_v25  ;;  %954 = vst [vmem:[%s1991_s25 + $0x68] sm:$0xff] %v934_v31  ;;  %v1055_v62 = vadd.f32 %v1054_v53, %v1036_v42  ;;  %v994_v2 = vsub.f32 %v934_v31, %v974_v56 }
 0x18b   : > { %v659_v39 = vpop.f32.mrf.mxu0 }
 0x18c   : > { %v935_v47 = vadd.f32 %v1984_v49, %v823_v33  ;;  %v1056_v8 = vadd.f32 %v1055_v62, %v1037_v55  ;;  %v1022_v17 = vsel %vm1006_vm0, %v994_v2, 0.0  ;;  %v979_v39 = vld [vmem:[%s2039_s15 + $0x90] sm:$0xff] }
 0x18d   : > { %v662_v44 = vpop.f32.mrf.mxu0  ;;  %v1042_v27 = vmul.f32 %v1022_v17, %v1022_v17 }
 0x18e   : > { %v828_v48 = vadd.f32 %v1393_v10, %v662_v44  ;;  %955 = vst [vmem:[%s1991_s25 + $0x70] sm:$0xff] %v935_v47  ;;  %v995_v9 = vsub.f32 %v935_v47, %v975_v60  ;;  %v1021_v10 = vsel %vm1006_vm0, %v993_v57, 0.0  ;;  %v1057_v13 = vadd.f32 %v1056_v8, %v1038_v61 }
 0x18f   : > { %v664_v52 = vpop.f32.mrf.mxu0  ;;  %v1041_v21 = vmul.f32 %v1021_v10, %v1021_v10 }
 0x190   : > { %v936_v1 = vadd.f32 %v1984_v49, %v828_v48  ;;  %v1058_v22 = vadd.f32 %v1057_v13, %v1039_v7  ;;  %v1023_v19 = vsel %vm1006_vm0, %v995_v9, 0.0  ;;  %v980_v48 = vld [vmem:[%s2039_s15 + $0x98] sm:$0xff] }
 0x191   : > { %v667_v59 = vpop.f32.mrf.mxu0  ;;  %v1043_v33 = vmul.f32 %v1023_v19, %v1023_v19 }
 0x192   : > { %v833_v63 = vadd.f32 %v832_v54, %v667_v59  ;;  %956 = vst [vmem:[%s1991_s25 + $0x78] sm:$0xff] %v936_v1  ;;  %v996_v16 = vsub.f32 %v936_v1, %v976_v6  ;;  %v1059_v28 = vadd.f32 %v1058_v22, %v1040_v12 }
 0x193   : > { %v669_v4 = vpop.f32.mrf.mxu0 }
 0x194   : > { %v937_v15 = vadd.f32 %v1984_v49, %v833_v63  ;;  %v1024_v30 = vsel %vm1006_vm0, %v996_v16, 0.0  ;;  %v1060_v34 = vadd.f32 %v1059_v28, %v1041_v21 }
 0x195   : > { %v672_v11 = vpop.f32.mrf.mxu0 }
 0x196   : > { %v838_v14 = vadd.f32 %v1396_v40, %v672_v11  ;;  %957 = vst [vmem:[%s1991_s25 + $0x80] sm:$0xff] %v937_v15  ;;  %v997_v23 = vsub.f32 %v937_v15, %v977_v0  ;;  %v1044_v40 = vmul.f32 %v1024_v30, %v1024_v30  ;;  %v1061_v32 = vadd.f32 %v1060_v34, %v1042_v27 }
 0x197   : > { %v674_v18 = vpop.f32.mrf.mxu0 }
 0x198   : > { %v938_v25 = vadd.f32 %v1984_v49, %v838_v14  ;;  %v1025_v36 = vsel %vm1006_vm0, %v997_v23, 0.0  ;;  %v1062_v46 = vadd.f32 %v1061_v32, %v1043_v33 }
 0x199   : > { %v677_v24 = vpop.f32.mrf.mxu0  ;;  %v1045_v42 = vmul.f32 %v1025_v36, %v1025_v36 }
 0x19a   : > { %v843_v29 = vadd.f32 %v842_v20, %v677_v24  ;;  %958 = vst [vmem:[%s1991_s25 + $0x88] sm:$0xff] %v938_v25  ;;  %v998_v35 = vsub.f32 %v938_v25, %v978_v26  ;;  %v1063_v51 = vadd.f32 %v1062_v46, %v1044_v40 }
 0x19b   : > { %v679_v31 = vpop.f32.mrf.mxu0 }
 0x19c   : > { %v939_v43 = vadd.f32 %v1984_v49, %v843_v29  ;;  %v1026_v44 = vsel %vm1006_vm0, %v998_v35, 0.0  ;;  %v1064_v55 = vadd.f32 %v1063_v51, %v1045_v42 }
 0x19d   : > { %v682_v37 = vpop.f32.mrf.mxu0  ;;  %v1046_v50 = vmul.f32 %v1026_v44, %v1026_v44 }
 0x19e   : > { %v848_v41 = vadd.f32 %v1399_v5, %v682_v37  ;;  %959 = vst [vmem:[%s1991_s25 + $0x90] sm:$0xff] %v939_v43  ;;  %v999_v47 = vsub.f32 %v939_v43, %v979_v39 }
 0x19f   : > { %v684_v45 = vpop.f32.mrf.mxu0  ;;  %v1065_v57 = vadd.f32 %v1064_v55, %v1046_v50 }
 0x1a0   : > { %v940_v52 = vadd.f32 %v1984_v49, %v848_v41  ;;  %v1027_v54 = vsel %vm1006_vm0, %v999_v47, 0.0 }
 0x1a1   : > { %v1047_v56 = vmul.f32 %v1027_v54, %v1027_v54 }
 0x1a2   : > { %960 = vst [vmem:[%s1991_s25 + $0x98] sm:$0xff] %v940_v52  ;;  %v1000_v53 = vsub.f32 %v940_v52, %v980_v48 }
 0x1a3   : > { %v1066_v60 = vadd.f32 %v1065_v57, %v1047_v56 }
 0x1a4   : > { %v1028_v58 = vsel %vm1006_vm0, %v1000_v53, 0.0 }
 0x1a5   : > { %v1048_v59 = vmul.f32 %v1028_v58, %v1028_v58 }
 0x1a7   : > { %v1067_v61 = vadd.f32 %v1066_v60, %v1048_v59 }
 0x1a9   : > { %1068 = vadd.xlane.f32.xlu0 %v1067_v61 }
 0x1aa   : > { %1593 = shalt.err (!%p1590_p5)
}
 0x1ab   : > { %s1594_s17 = scalar_lea.hbm %s2154_s26, 2560  ;;  %s1598_s25 = scalar_lea.hbm %s2233_s5, 5120 }
 0x1ac   : > { %p1595_p9 = scmp.ne.s32.totalorder %s2154_s26, %s1594_s17  ;;  %p1599_p7 = scmp.lt.s32.totalorder %s2154_s26, %s2233_s5 }
 0x1ad   : > { %p1600_p1 = scmp.lt.s32.totalorder %s1598_s25, %s1594_s17 }
 0x1ae   : > { %p1596_p11 = pnand %p1595_p9, %p2246_p13 }
 0x1af   : > { %p1601_p10 = por %p1600_p1, %p1599_p7 }
 0x1b0   : > { %p1597_p0 = pneg %p1596_p11 }
 0x1b2   : > { %p1602_p12 = pnand %p1601_p10, %p1597_p0 }
 0x1b4   : > { %1605 = shalt.err (!%p1602_p12)
}
 0x1b5   : > { %s1706_s13 = smov 128   ;;  %s1707_s16 = smov 256  }
 0x1b6   : > { %s1708_s12 = smov 8   ;;  %s1294_s14 = sshll.u32 %s1889_s27, 3 }
 0x1b7   : > { %1415 = dma.vmem_to_hbm [thread:$0]  (%p2246_p13), %s2156_s21, 2560, %s2154_s26, %s1085_s11, %s1706_s13, %s1707_s16, %s1708_s12  }
 0x1b8   : > { %s353_s28 = scalar_lea.vmem [#allocation8], %s1294_s14  ;;  %s1098_s11 = scalar_lea.hbm %s2232_s4, %s2029_s10 }
 0x1b9   : > { %s1100_s17 = sshll.u32 %s353_s28, 4  ;;  %s1080_s7 = scalar_lea.sflag [#allocation4], %s1889_s27  ;;  %s2182_s17 = int_to_ptr.vmem [resolvable:$true] %s1100_s17 }
 0x1ba   : > { %s1606_s25 = scalar_lea.vmem %s2182_s17, 128  ;;  %s1709_s15 = smov [#allocation8]  }
 0x1bb   : > { %p1607_p2 = scmp.ne.s32.totalorder %s2182_s17, %s1606_s25  ;;  %s1610_s6 = sshll.u32 %s1709_s15, 4  ;;  %s1611_s6 = int_to_ptr.vmem [resolvable:$false] %s1610_s6 }
 0x1bc   : > { %s1612_s13 = scalar_lea.vmem %s1611_s6, 256  ;;  %p1613_p6 = scmp.lt.s32.totalorder %s2182_s17, %s1611_s6 }
 0x1bd   : > { %p1608_p8 = pnand %p1607_p2, %p2246_p13  ;;  %p1614_p3 = scmp.lt.s32.totalorder %s1612_s13, %s1606_s25 }
 0x1bf   : > { %p1609_p4 = pneg %p1608_p8  ;;  %p1615_p5 = por %p1614_p3, %p1613_p6 }
 0x1c1   : > { %p1616_p9 = pnand %p1615_p5, %p1609_p4 }
 0x232   : > { %v1069_v49 = vpop.xlane.xlu0 %1068 }
 0x233   : > { %v1070_v38 = vrot.slane %v1069_v49, 4 }
 0x235   : > { %v1071_v62 = vadd.f32 %v1070_v38, %v1069_v49 }
 0x237   : > { %v1072_v63 = vrot.slane %v1071_v62, 2 }
 0x239   : > { %v1073_v1 = vadd.f32 %v1072_v63, %v1071_v62 }
 0x23b   : > { %v1074_v2 = vrot.slane %v1073_v1, 1 }
 0x23d   : > { %v1075_v3 = vadd.f32 %v1074_v2, %v1073_v1 }
 0x23f   : > { %1404 = vpush %v1075_v3 }
 0x270   : > { %s1405_s8 = spop %1404 }
 0x271   : > { %v1077_v4 = vstv %s1405_s8 }
 0x272   : > { %1078 = vst [vmem:[%s353_s28] sm:$0xff] %v1077_v4 }
 0x273   : > { %1619 = shalt.err (!%p1616_p9)
}
 0x274   : > { %s1620_s16 = scalar_lea.hbm %s1098_s11, 128  ;;  %s1624_s12 = scalar_lea.hbm %s2232_s4, 256 }
 0x275   : > { %p1621_p11 = scmp.ne.s32.totalorder %s1098_s11, %s1620_s16  ;;  %p1625_p1 = scmp.lt.s32.totalorder %s1098_s11, %s2232_s4 }
 0x276   : > { %p1626_p10 = scmp.lt.s32.totalorder %s1624_s12, %s1620_s16 }
 0x277   : > { %p1622_p0 = pnand %p1621_p11, %p2246_p13 }
 0x278   : > { %p1627_p12 = por %p1626_p10, %p1625_p1 }
 0x279   : > { %p1623_p7 = pneg %p1622_p0 }
 0x27b   : > { %p1628_p2 = pnand %p1627_p12, %p1623_p7 }
 0x27d   : > { %1631 = shalt.err (!%p1628_p2)
}
 0x27e   : > { %1414 = dma.vmem_to_hbm [thread:$0]  (%p2246_p13), %s2182_s17, 128, %s1098_s11, %s1080_s7  }
 0x27f PF: > { %s1130_s8 = sand.u32 1, %s1674_s18   ;;  %p2247_p8 = scmp.ne.s32.totalorder %s2240_s9, 0 }
 0x280   : > { %p2248_p4 = scmp.ge.s32.totalorder %s1694_s23, 2  ;;  %s1131_s21 = scalar_lea.sflag [#allocation4], %s1130_s8 }
 0x282   : > { %p1430_p6 = pnand %p2248_p4, %p2247_p8 }
 0x284   : > { %p1431_p3 = pneg %p1430_p6 }
 0x286   : > { %1665 = dma.done.wait (%p1431_p3), %s1131_s21, 128  }
 0x287   : > { %1667 = vsyncadd (%p1431_p3), %s1131_s21, 4294967168  ;;  %s1140_s26 = scalar_lea.sflag [#allocation10], %s1130_s8 }
 0x288   : > { %1669 = dma.done.wait (%p1431_p3), %s1140_s26, 2560  }
 0x289   : > { %1671 = vsyncadd (%p1431_p3), %s1140_s26, 4294964736  ;;  %s26_s23 = sadd.s32 1, %s1694_s23   ;;  %s2249_s18 = smov %s1678_s19 }
 0x28a   : > { %p23_p5 = scmp.ge.s32.totalorder %s26_s23, 4   ;;  %s2250_s19 = smov %s1682_s20 }
 0x28b   : > { %s2251_s20 = smov %s1788_s30  ;;  %s2252_s21 = smov %s1690_s22 }
 0x28c   : > { %s2253_s22 = smov %s2255_s24  ;;  %25 = sbr.rel (!%p23_p5) target bundleno = 9 (0x9), region = 126 }
 0x291   :  { %1145 = vsyncpa [#allocation3], 1 }
 0x292   :  { %1147 = vsyncpa [#allocation3 + $0x1], 1 }
 0x293   :  { %1148 = vsyncpa [#allocation6], 1 }
 0x294   :  { %1150 = vsyncpa [#allocation6 + $0x1], 1 }
 0x295   :  { %1151 = vsyncpa [#allocation4], 1 }
 0x296   :  { %1153 = vsyncpa [#allocation4 + $0x1], 1 }
 0x297   :  { %1154 = vsyncpa [#allocation10], 1 }
 0x298   :  { %1156 = vsyncpa [#allocation10 + $0x1], 1 }

</bundles_post_ra>
